<compile_context>
chip_gen: v7x
topology: tpu7x:2x2x1
jax: 0.10.0
libtpu: 0.0.40
codegen_flags: <defaults>
</compile_context>

<pallas_src>
import jax
import jax.numpy as jnp
from jax.experimental import pallas as pl
from jax.experimental.pallas import tpu as pltpu

LANE = 128              # lane width; batch axis is tiled in multiples of this
MAX_BATCH_TILE = 8192   # large tiles amortize the ~0.35us/grid-step overhead

IN_F, H1_F, H2_F, OUT_F = 5, 8, 4, 12        # logical feature dims
IN_P, H1_P, H2_P, OUT_P = 8, 8, 8, 16        # sublane-padded feature dims


def _round_up(n, m):
    return (n + m - 1) // m * m


def _mlp_kernel(x_ref, w1_ref, b1_ref, w2_ref, b2_ref, w3_ref, b3_ref, o_ref):
    # x_ref: [8, TB]  (features on sublanes, batch on lanes)
    # w*:    [out_pad, in_pad]    b*: [out_pad, 1]    o_ref: [16, TB]
    x = x_ref[...]

    h = jnp.dot(w1_ref[...], x, preferred_element_type=jnp.float32) + b1_ref[...]
    h = jnp.maximum(h, 0.0)

    h = jnp.dot(w2_ref[...], h, preferred_element_type=jnp.float32) + b2_ref[...]
    h = jnp.maximum(h, 0.0)

    h = jnp.dot(w3_ref[...], h, preferred_element_type=jnp.float32) + b3_ref[...]
    h = jnp.maximum(h, 0.0)

    o_ref[...] = h.astype(o_ref.dtype)


def pad_params_transposed(params):
    """Transpose weights to [out, in] and zero-pad to the sublane-padded dims
    (done once, outside the hot path)."""
    def pad_wt(w, out_p, in_p):
        out = jnp.zeros((out_p, in_p), jnp.float32)
        return out.at[: w.shape[1], : w.shape[0]].set(w.T)

    def pad_bt(b, out_p):
        out = jnp.zeros((out_p, 1), jnp.float32)
        return out.at[: b.shape[1], 0].set(b[0])

    return {
        "w1": pad_wt(params["w1"], H1_P, IN_P),  "b1": pad_bt(params["b1"], H1_P),
        "w2": pad_wt(params["w2"], H2_P, H1_P),  "b2": pad_bt(params["b2"], H2_P),
        "w3": pad_wt(params["w3"], OUT_P, H2_P), "b3": pad_bt(params["b3"], OUT_P),
    }


def simple_model_forward(x, tparams):
    """x: [batch, 5] float32; tparams: output of pad_params_transposed."""
    batch, in_f = x.shape

    # Batch tile: multiple of the 128-lane width, large enough to amortize
    # per-step overhead, and chosen so batches bigger than one tile give >= 2
    # grid steps (so both v7x TensorCores get work from the "parallel" axis).
    tb = min(MAX_BATCH_TILE, _round_up(pl.cdiv(batch, 2), LANE))
    batch_p = _round_up(batch, tb)
    grid = (batch_p // tb,)

    # Narrow, transposed HBM activations: only 8 f32 per batch element in,
    # 16 f32 per batch element out (vs 128 previously).
    x_t = jnp.zeros((IN_P, batch_p), jnp.float32).at[:in_f, :batch].set(x.T)

    in_act_spec = pl.BlockSpec((IN_P, tb), lambda i: (0, i))
    out_act_spec = pl.BlockSpec((OUT_P, tb), lambda i: (0, i))
    # Grid-invariant weights/biases: same block every step -> VMEM-resident.
    w1_spec = pl.BlockSpec((H1_P, IN_P), lambda i: (0, 0))
    b1_spec = pl.BlockSpec((H1_P, 1), lambda i: (0, 0))
    w2_spec = pl.BlockSpec((H2_P, H1_P), lambda i: (0, 0))
    b2_spec = pl.BlockSpec((H2_P, 1), lambda i: (0, 0))
    w3_spec = pl.BlockSpec((OUT_P, H2_P), lambda i: (0, 0))
    b3_spec = pl.BlockSpec((OUT_P, 1), lambda i: (0, 0))

    # Cost estimate in terms of what the kernel actually moves/computes
    # (padded shapes) so XLA schedules neighbouring ops realistically.
    flops = 2 * batch_p * (IN_P * H1_P + H1_P * H2_P + H2_P * OUT_P)
    param_bytes = (H1_P * IN_P + H1_P + H2_P * H1_P + H2_P
                   + OUT_P * H2_P + OUT_P) * 4
    bytes_accessed = batch_p * (IN_P + OUT_P) * 4 + param_bytes

    out_t = pl.pallas_call(
        _mlp_kernel,
        out_shape=jax.ShapeDtypeStruct((OUT_P, batch_p), jnp.float32),
        grid=grid,
        in_specs=[
            in_act_spec,
            w1_spec, b1_spec,
            w2_spec, b2_spec,
            w3_spec, b3_spec,
        ],
        out_specs=out_act_spec,
        compiler_params=pltpu.CompilerParams(
            dimension_semantics=("parallel",),
            vmem_limit_bytes=32 * 1024 * 1024,
        ),
        cost_estimate=pl.CostEstimate(
            flops=flops, transcendentals=0, bytes_accessed=bytes_accessed),
    )(x_t,
      tparams["w1"], tparams["b1"],
      tparams["w2"], tparams["b2"],
      tparams["w3"], tparams["b3"])

    # Drop padded output features / padded batch lanes, back to [batch, 12].
    return out_t[:OUT_F, :batch].T


def init_params(key):
    """Deterministic parameter init mimicking torch.nn.Linear defaults
    (uniform in [-1/sqrt(fan_in), 1/sqrt(fan_in)]). Weights stored
    [in_features, out_features]."""
    dims = [(IN_F, H1_F), (H1_F, H2_F), (H2_F, OUT_F)]
    params = {}
    for idx, (fan_in, fan_out) in enumerate(dims, start=1):
        key, kw, kb = jax.random.split(key, 3)
        bound = 1.0 / (fan_in ** 0.5)
        params[f"w{idx}"] = jax.random.uniform(
            kw, (fan_in, fan_out), jnp.float32, minval=-bound, maxval=bound)
        params[f"b{idx}"] = jax.random.uniform(
            kb, (1, fan_out), jnp.float32, minval=-bound, maxval=bound)
    return params


def reference_forward(x, params):
    h = jnp.maximum(x @ params["w1"] + params["b1"], 0.0)
    h = jnp.maximum(h @ params["w2"] + params["b2"], 0.0)
    h = jnp.maximum(h @ params["w3"] + params["b3"], 0.0)
    return h


if __name__ == "__main__":
    key = jax.random.PRNGKey(0)
    key, kx = jax.random.split(key)

    batch = 8
    x = jax.random.normal(kx, (batch, IN_F), jnp.float32)
    params = init_params(key)
    tparams = pad_params_transposed(params)

    out = simple_model_forward(x, tparams)
    out = jax.block_until_ready(out)

    ref = reference_forward(x, params)
    assert out.shape == (batch, OUT_F), out.shape
    assert jnp.allclose(out, ref, atol=1e-5, rtol=1e-5), "mismatch vs reference"

    print("KERNEL_OK")
</pallas_src>

<mosaic_0001>
module attributes {stable_mosaic.version = 11 : i64} {
  func.func @_mlp_kernel(%arg0: i32, %arg1: memref<8x128xf32, #tpu.memory_space<vmem>>, %arg2: memref<8x8xf32, #tpu.memory_space<vmem>>, %arg3: memref<8x1xf32, #tpu.memory_space<vmem>>, %arg4: memref<8x8xf32, #tpu.memory_space<vmem>>, %arg5: memref<8x1xf32, #tpu.memory_space<vmem>>, %arg6: memref<16x8xf32, #tpu.memory_space<vmem>>, %arg7: memref<16x1xf32, #tpu.memory_space<vmem>>, %arg8: memref<16x128xf32, #tpu.memory_space<vmem>>) attributes {dimension_semantics = [#tpu.dimension_semantics<parallel>], iteration_bounds = array<i64: 1>, scalar_prefetch = 0 : i64, scratch_operands = 0 : i64, tpu.core_type = #tpu.core_type<tc>, window_params = [{transform_indices = @transform_0, window_bounds = array<i64: 8, 128>}, {pipeline_mode = #tpu.pipeline_mode<synchronous>, transform_indices = @transform_1, window_bounds = array<i64: 8, 8>}, {pipeline_mode = #tpu.pipeline_mode<synchronous>, transform_indices = @transform_2, window_bounds = array<i64: 8, 1>}, {pipeline_mode = #tpu.pipeline_mode<synchronous>, transform_indices = @transform_3, window_bounds = array<i64: 8, 8>}, {pipeline_mode = #tpu.pipeline_mode<synchronous>, transform_indices = @transform_4, window_bounds = array<i64: 8, 1>}, {pipeline_mode = #tpu.pipeline_mode<synchronous>, transform_indices = @transform_5, window_bounds = array<i64: 16, 8>}, {pipeline_mode = #tpu.pipeline_mode<synchronous>, transform_indices = @transform_6, window_bounds = array<i64: 16, 1>}, {transform_indices = @transform_7, window_bounds = array<i64: 16, 128>}]} {
    %c0 = arith.constant 0 : index
    %c0_0 = arith.constant 0 : index
    %0 = vector.load %arg1[%c0, %c0_0] : memref<8x128xf32, #tpu.memory_space<vmem>>, vector<8x128xf32>
    %c0_1 = arith.constant 0 : index
    %c0_2 = arith.constant 0 : index
    %1 = vector.load %arg2[%c0_1, %c0_2] : memref<8x8xf32, #tpu.memory_space<vmem>>, vector<8x8xf32>
    %cst = arith.constant dense<0.000000e+00> : vector<8x128xf32>
    %2 = tpu.matmul %1, %0, %cst {dimension_numbers = #tpu.dot_dimension_numbers<[1], [0], [0], [1], [0, 0, 1, 1], [], []>} : vector<8x8xf32>, vector<8x128xf32>, vector<8x128xf32> -> vector<8x128xf32>
    %c0_3 = arith.constant 0 : index
    %c0_4 = arith.constant 0 : index
    %3 = vector.load %arg3[%c0_3, %c0_4] : memref<8x1xf32, #tpu.memory_space<vmem>>, vector<8x1xf32>
    %4 = vector.broadcast %3 : vector<8x1xf32> to vector<8x128xf32>
    %5 = arith.addf %2, %4 : vector<8x128xf32>
    %cst_5 = arith.constant 0.000000e+00 : f32
    %6 = vector.broadcast %cst_5 : f32 to vector<8x128xf32>
    %7 = arith.maximumf %5, %6 : vector<8x128xf32>
    %c0_6 = arith.constant 0 : index
    %c0_7 = arith.constant 0 : index
    %8 = vector.load %arg4[%c0_6, %c0_7] : memref<8x8xf32, #tpu.memory_space<vmem>>, vector<8x8xf32>
    %cst_8 = arith.constant dense<0.000000e+00> : vector<8x128xf32>
    %9 = tpu.matmul %8, %7, %cst_8 {dimension_numbers = #tpu.dot_dimension_numbers<[1], [0], [0], [1], [0, 0, 1, 1], [], []>} : vector<8x8xf32>, vector<8x128xf32>, vector<8x128xf32> -> vector<8x128xf32>
    %c0_9 = arith.constant 0 : index
    %c0_10 = arith.constant 0 : index
    %10 = vector.load %arg5[%c0_9, %c0_10] : memref<8x1xf32, #tpu.memory_space<vmem>>, vector<8x1xf32>
    %11 = vector.broadcast %10 : vector<8x1xf32> to vector<8x128xf32>
    %12 = arith.addf %9, %11 : vector<8x128xf32>
    %cst_11 = arith.constant 0.000000e+00 : f32
    %13 = vector.broadcast %cst_11 : f32 to vector<8x128xf32>
    %14 = arith.maximumf %12, %13 : vector<8x128xf32>
    %c0_12 = arith.constant 0 : index
    %c0_13 = arith.constant 0 : index
    %15 = vector.load %arg6[%c0_12, %c0_13] : memref<16x8xf32, #tpu.memory_space<vmem>>, vector<16x8xf32>
    %cst_14 = arith.constant dense<0.000000e+00> : vector<16x128xf32>
    %16 = tpu.matmul %15, %14, %cst_14 {dimension_numbers = #tpu.dot_dimension_numbers<[1], [0], [0], [1], [0, 0, 1, 1], [], []>} : vector<16x8xf32>, vector<8x128xf32>, vector<16x128xf32> -> vector<16x128xf32>
    %c0_15 = arith.constant 0 : index
    %c0_16 = arith.constant 0 : index
    %17 = vector.load %arg7[%c0_15, %c0_16] : memref<16x1xf32, #tpu.memory_space<vmem>>, vector<16x1xf32>
    %18 = vector.broadcast %17 : vector<16x1xf32> to vector<16x128xf32>
    %19 = arith.addf %16, %18 : vector<16x128xf32>
    %cst_17 = arith.constant 0.000000e+00 : f32
    %20 = vector.broadcast %cst_17 : f32 to vector<16x128xf32>
    %21 = arith.maximumf %19, %20 : vector<16x128xf32>
    %c0_18 = arith.constant 0 : index
    %c0_19 = arith.constant 0 : index
    %22 = vector.load %arg8[%c0_18, %c0_19] : memref<16x128xf32, #tpu.memory_space<vmem>>, vector<16x128xf32>
    tpu.vector_store %arg8[%c0_18, %c0_19], %21 {strides = array<i32>} : memref<16x128xf32, #tpu.memory_space<vmem>>, vector<16x128xf32>,
    return
  }
  func.func @transform_0(%arg0: i32) -> (i32, i32) {
    %c0_i32 = arith.constant 0 : i32
    %c0_i32_0 = arith.constant 0 : i32
    return %c0_i32, %arg0 : i32, i32
  }
  func.func @transform_1(%arg0: i32) -> (i32, i32) {
    %c0_i32 = arith.constant 0 : i32
    %c0_i32_0 = arith.constant 0 : i32
    %c0_i32_1 = arith.constant 0 : i32
    return %c0_i32, %c0_i32_0 : i32, i32
  }
  func.func @transform_2(%arg0: i32) -> (i32, i32) {
    %c0_i32 = arith.constant 0 : i32
    %c0_i32_0 = arith.constant 0 : i32
    %c0_i32_1 = arith.constant 0 : i32
    return %c0_i32, %c0_i32_0 : i32, i32
  }
  func.func @transform_3(%arg0: i32) -> (i32, i32) {
    %c0_i32 = arith.constant 0 : i32
    %c0_i32_0 = arith.constant 0 : i32
    %c0_i32_1 = arith.constant 0 : i32
    return %c0_i32, %c0_i32_0 : i32, i32
  }
  func.func @transform_4(%arg0: i32) -> (i32, i32) {
    %c0_i32 = arith.constant 0 : i32
    %c0_i32_0 = arith.constant 0 : i32
    %c0_i32_1 = arith.constant 0 : i32
    return %c0_i32, %c0_i32_0 : i32, i32
  }
  func.func @transform_5(%arg0: i32) -> (i32, i32) {
    %c0_i32 = arith.constant 0 : i32
    %c0_i32_0 = arith.constant 0 : i32
    %c0_i32_1 = arith.constant 0 : i32
    return %c0_i32, %c0_i32_0 : i32, i32
  }
  func.func @transform_6(%arg0: i32) -> (i32, i32) {
    %c0_i32 = arith.constant 0 : i32
    %c0_i32_0 = arith.constant 0 : i32
    %c0_i32_1 = arith.constant 0 : i32
    return %c0_i32, %c0_i32_0 : i32, i32
  }
  func.func @transform_7(%arg0: i32) -> (i32, i32) {
    %c0_i32 = arith.constant 0 : i32
    %c0_i32_0 = arith.constant 0 : i32
    return %c0_i32, %arg0 : i32, i32
  }
}

</mosaic_0001>

<bundles_post_ra>
// kernel: tpu_custom_call.1
= control target key start
LH: loop header
LB: loop body
LE: loop exit
PB: predicated region body
PF: predicated region fallthrough
CT: control target
= control target key end

     0   :  { %vm35_vm0 = vcmask 64512   ;;  %v364_v2 = vmov 0.0   ;;  %vm365_vm1 = vmmov 0   ;;  %s453_s0 = inlined_call_operand.vmem [shape: f32[8,128], index: 0, kind: input, shape index: {}]   ;;  %s454_s1 = inlined_call_operand.vmem [shape: f32[8,8], index: 1, kind: input, shape index: {}]   ;;  %s455_s2 = inlined_call_operand.vmem [shape: f32[8,1], index: 2, kind: input, shape index: {}]   ;;  %s456_s3 = inlined_call_operand.vmem [shape: f32[8,8], index: 3, kind: input, shape index: {}]   ;;  %s457_s4 = inlined_call_operand.vmem [shape: f32[8,1], index: 4, kind: input, shape index: {}]   ;;  %s458_s5 = inlined_call_operand.vmem [shape: f32[16,8], index: 5, kind: input, shape index: {}]   ;;  %s459_s6 = inlined_call_operand.vmem [shape: f32[16,1], index: 6, kind: input, shape index: {}]   ;;  %s460_s7 = inlined_call_operand.hbm [shape: f32[16,128], index: 7, kind: output, shape index: {}]  }
   0x1   :  { %v27_v0 = vld [vmem:[%s453_s0] sm:$0xff]  ;;  %317 = vmatprep.subr.mxu0 %v364_v2  ;;  %319 = vmatprep.mubr.msk.f32.mxu0 %vm365_vm1, %v364_v2 }
   0x2   :  { %v28_v1 = vld [vmem:[%s454_s1] sm:$0xff] }
   0x3   :  { %v29_v3 = vld [vmem:[%s455_s2] sm:$0xff] }
   0x4   :  { %12 = vsyncpa [#allocation3], 0  ;;  %318 = vmatpush3.msra.mxu0 %v27_v0  ;;  %v366_v4 = vmov 0   ;;  %v111_v5 = vld [vmem:[%s457_s4] sm:$0xff]  ;;  %322 = vmatprep.subr.mxu1 %v364_v2  ;;  %v194_v14 = vld [vmem:[%s459_s6 + $0x8] sm:$0xff]  ;;  %s367_s14 = smov [#allocation2]  }
   0x5   :  { %338 = vset.pattern.permute.xlu0 %v366_v4  ;;  %320 = vmatmul.mubr.msk.f32.vlgmr.msra.gmra.mrb[0].mxu0 %vm35_vm0, %v28_v1  ;;  %v110_v11 = vld [vmem:[%s456_s3] sm:$0xff]  ;;  %v192_v20 = vld [vmem:[%s458_s5 + $0x8] sm:$0xff]  ;;  %s295_s15 = sshll.u32 %s367_s14, 4  ;;  %s296_s15 = int_to_ptr.vmem [resolvable:$true] %s295_s15 }
   0x6   :  { %32 = vperm.xlu0 %338, %v29_v3   ;;  %324 = vmatprep.mubr.msk.f32.mxu1 %vm365_vm1, %v364_v2  ;;  %v191_v12 = vld [vmem:[%s458_s5] sm:$0xff]  ;;  %p345_p1 = scmp.lt.s32.totalorder %s296_s15, %s296_s15 }
   0x7   :  { %339 = vset.pattern.permute.xlu1 %v366_v4  ;;  %329 = vmatprep.mubr.msk.f32.mxu0 %vm35_vm0, %v191_v12  ;;  %v193_v13 = vld [vmem:[%s459_s6] sm:$0xff]  ;;  %s340_s6 = scalar_lea.vmem %s296_s15, 256 }
   0x8   :  { %197 = vperm.xlu1 %339, %v193_v13   ;;  %p341_p0 = scmp.ne.s32.totalorder %s296_s15, %s340_s6  ;;  %p346_p2 = scmp.lt.s32.totalorder %s340_s6, %s340_s6 }
   0xa   :  { %114 = vperm.xlu0 %338, %v111_v5   ;;  %p347_p3 = por %p346_p2, %p345_p1 }
   0xc   :  { %202 = vperm.xlu1 %339, %v194_v14   ;;  %p348_p4 = pnand %p347_p3, %p341_p0 }
  0x85   :  { %v33_v6 = vpop.permute.xlu0 %32 }
  0x87   :  { %v198_v21 = vpop.permute.xlu1 %197 }
  0x89   :  { %v115_v15 = vpop.permute.xlu0 %114 }
  0x8b   :  { %v203_v22 = vpop.permute.xlu1 %202 }
  0xd8   :  { %v105_v7 = vpop.f32.mrb[0].mxu0 }
  0xd9   :  { %v106_v8 = vadd.f32 %v105_v7, %v33_v6  ;;  %v321_v9 = vpop.f32.mrb[1].mxu0 }
  0xdb   :  { %v109_v10 = vmax.f32 %v106_v8, 0.0 }
  0xdd   :  { %323 = vmatpush3.msra.mxu1 %v109_v10 }
  0xde   :  { %325 = vmatmul.mubr.msk.f32.vlgmr.msra.gmra.mrb[0].mxu1 %vm35_vm0, %v110_v11 }
 0x1b1   :  { %v186_v16 = vpop.f32.mrb[0].mxu1 }
 0x1b2   :  { %v187_v17 = vadd.f32 %v186_v16, %v115_v15  ;;  %v326_v18 = vpop.f32.mrb[1].mxu1 }
 0x1b4   :  { %v190_v19 = vmax.f32 %v187_v17, 0.0 }
 0x1b6   :  { %327 = vmatprep.subr.mxu0 %v190_v19 }
 0x1b7   :  { %328 = vmatpush3.msra.mxu0 %v190_v19 }
 0x1b8   :  { %330 = vmatmul.mubr.msk.f32.vlgmr.msra.gmra.mrb[2].mxu0 %vm35_vm0, %v192_v20 }
 0x28b   :  { %v331_v23 = vpop.f32.mrb[2].mxu0 }
 0x28c   :  { %v283_v24 = vadd.f32 %v331_v23, %v203_v22  ;;  %v277_v25 = vpop.f32.mrb[3].mxu0 }
 0x28d   :  { %v278_v26 = vadd.f32 %v277_v25, %v198_v21 }
 0x28e   :  { %v287_v27 = vmax.f32 %v283_v24, 0.0 }
 0x28f   :  { %v286_v28 = vmax.f32 %v278_v26, 0.0 }
 0x290   :  { %289 = vst [vmem:[#allocation2 + $0x8] sm:$0xff] %v287_v27 }
 0x291   :  { %288 = vst [vmem:[#allocation2] sm:$0xff] %v286_v28 }
 0x292   :  { %351 = shalt.err (!%p348_p4)
}
 0x293   :  { %s352_s17 = scalar_lea.hbm %s460_s7, 256 }
 0x294   :  { %p353_p5 = scmp.ne.s32.totalorder %s460_s7, %s352_s17  ;;  %p356_p6 = scmp.lt.u32.totalorder %s352_s17, %s460_s7 }
 0x296   :  { %p358_p7 = pnand %p356_p6, %p353_p5 }
 0x298   :  { %361 = shalt.err (!%p358_p7)
}
 0x299   :  { %s368_s22 = smov 128   ;;  %s369_s23 = smov 8  }
 0x29a   :  { %301 = dma.vmem_to_hbm [thread:$0]  %s296_s15, 256, %s460_s7, [#allocation3], %s368_s22, %s368_s22, %s369_s23  }
 0x29b   :  { %362 = dma.done.wait [#allocation3], 256  }
 0x29c   :  { %363 = vsyncadd [#allocation3], 4294967040 }
 0x29d   :  { %305 = vsyncpa [#allocation3], 1 }

</bundles_post_ra>
